<compile_context>
chip_gen: v6e
topology: v6e:2x2x1
jax: 0.10.0
libtpu: 0.0.40
codegen_flags: <defaults>
</compile_context>

<pallas_src>
import jax
import jax.numpy as jnp
from jax import lax
from jax.experimental import pallas as pl
from jax.experimental.pallas import tpu as pltpu  # noqa: F401  (TPU backend)
import numpy as np

# ----------------------------- configuration --------------------------------
B = 2
CHANS = 4
SAMPLES = 64
KL = 16            # kernLenght (block1 temporal kernel)
F1 = 4
D = 2
F2 = 8
F1D = F1 * D

PAD_L = KL // 2 - 1          # 7
PAD_R = KL - KL // 2         # 8
S_PAD = SAMPLES + KL - 1     # 79

T1 = SAMPLES // 4            # 16  (after block1 AvgPool(1,4))
T2 = T1 // 8                 # 2   (after block2 AvgPool(1,8))
KL2 = 16                     # block2 depthwise kernel length
P2L, P2R = 7, 8              # block2 ZeroPad2d

LANES_B1 = B * SAMPLES       # 128  block1 activation lanes (b*SAMPLES + t)
LANES_DD = F1D * B * T1      # 256  expanded depthwise lanes (f*32 + b*16 + t')
LANES_D = B * T1             # 32
LANES_OUT = B * T2           # 4
SLAB_W = 768                 # small-parameter slab width (128-aligned fields)

# Fail loudly if the hard-coded packing assumptions change (review concern #2).
assert F1D == 8 and F2 == 8
assert KL * CHANS == 64 and LANES_B1 == 128
assert LANES_DD == 256 and LANES_D == 32 and SLAB_W >= 512 + LANES_DD


def _elu(v):
    # clamp the exp argument so the unused branch never produces inf
    return jnp.where(v > 0, v, jnp.exp(jnp.minimum(v, 0.0)) - 1.0)


# ------------------------------- kernel -------------------------------------
def eegnet_kernel(xim_ref, slab_ref, gall_ref, rsum_ref, p8_ref, out_ref):
    """Full EEGNet_feature forward for one B=2 batch, single invocation.

    xim_ref : (KL*CHANS, B*SAMPLES) = (64, 128)   host-built block1 im2col
    slab_ref: (8, 768)   small weights/biases, 128-aligned lane-dense fields
    gall_ref: (B*SAMPLES, F1D*B*T1) = (128, 256)  pool4 + pad + depthwise taps
    rsum_ref: (F1D*B*T1, B*T1)      = (256, 32)   sum-over-channel-blocks
    p8_ref  : (B*T1, B*T2)          = (32, 4)     AvgPool(1,8)
    out_ref : (F2, B*T2)            = (8, 4)
    """
    w1 = slab_ref[:, 0:KL * CHANS]            # (8, 64)   fused block1 weights
    b1 = slab_ref[:, 128:256]                 # (8, 128)  bias1, lane-broadcast
    wp = slab_ref[:, 256:256 + F1D]           # (8, 8)    pointwise (BN3 folded)
    b3 = slab_ref[:, 384:384 + LANES_D]       # (8, 32)   bias3, lane-broadcast
    dm = slab_ref[:, 512:512 + LANES_DD]      # (8, 256)  channel-diagonal mask

    # block1: temporal conv + BN1 + depthwise spatial conv + BN2 -> one matmul
    z = jnp.dot(w1, xim_ref[...], preferred_element_type=jnp.float32)       # (8,128)
    a = _elu(z + b1)

    # AvgPool(1,4) + ZeroPad2d((7,8)) + block2 depthwise(1,16), folded in GALL
    dd = jnp.dot(a, gall_ref[...], preferred_element_type=jnp.float32)      # (8,256)
    d = jnp.dot(dd * dm, rsum_ref[...], preferred_element_type=jnp.float32)  # (8,32)

    # pointwise 1x1 conv (+ BN3 scale folded) + bias + ELU
    y = _elu(jnp.dot(wp, d, preferred_element_type=jnp.float32) + b3)       # (8,32)

    # AvgPool2d((1,8))
    out_ref[...] = jnp.dot(y, p8_ref[...], preferred_element_type=jnp.float32)  # (8,4)


# ----------------------- host-side constant folding --------------------------
def _prepare_constants(params):
    """Fold BatchNorms into weights, build all constant matrices (host side).

    These depend only on the trained parameters; in a deployment they would be
    computed once and cached.  All iota-style constructions happen here, never
    inside the kernel.
    """
    (w1, s1, b1, wdw_full, s2, b2, wdw2, wpw, s3, b3) = params

    # ---- block1: fold BN1/BN2, fuse temporal + depthwise spatial conv -------
    s1e = jnp.repeat(s1, D)                       # s1[f1d // D]
    w1e = jnp.repeat(w1, D, axis=0)               # (F1D, KL)
    w1f = ((s2 * s1e)[:, None, None] * w1e[:, :, None]
           * wdw_full[:, None, :]).reshape(F1D, KL * CHANS)          # (8, 64)
    bias1 = s2 * jnp.repeat(b1, D) * wdw_full.sum(axis=1) + b2       # (F1D,)

    # ---- block2: GALL folds AvgPool(1,4) + ZeroPad2d((7,8)) + depthwise taps
    #   GALL[b*S + t, f*32 + b*16 + t'] = 0.25 * wdw2[f, t//4 + 7 - t']  (if valid)
    t_idx = np.arange(SAMPLES)
    k_need = t_idx[:, None] // 4 + P2L - np.arange(T1)[None, :]      # (64, 16)
    valid = (k_need >= 0) & (k_need < KL2)
    k_clip = np.clip(k_need, 0, KL2 - 1)
    g_small = 0.25 * jnp.where(jnp.asarray(valid)[None],
                               wdw2[:, k_clip], 0.0)                 # (F1D, 64, 16)
    eye_b = jnp.eye(B, dtype=jnp.float32)
    gall = jnp.einsum('bc,ftu->btfcu', eye_b, g_small).reshape(
        B * SAMPLES, F1D * B * T1)                                   # (128, 256)

    # channel-diagonal mask and block-sum matrix (static 0/1 constants)
    dmask = jnp.asarray(np.repeat(np.eye(F1D, dtype=np.float32),
                                  B * T1, axis=1))                   # (8, 256)
    rsum = jnp.asarray(np.tile(np.eye(B * T1, dtype=np.float32),
                               (F1D, 1)))                            # (256, 32)

    wps3 = wpw * s3[:, None]                                         # (8, 8)

    # ---- AvgPool(1,8) matrix (batch-respecting) ------------------------------
    r = np.arange(B * T1)
    c = np.arange(B * T2)
    p8 = np.where((r[:, None] // T1 == c[None, :] // T2)
                  & ((r[:, None] % T1) // 8 == c[None, :] % T2), 0.125, 0.0)
    p8 = jnp.asarray(p8, jnp.float32)                                # (32, 4)

    # ---- small slab: lane-dense, 128-aligned fields, biases lane-broadcast ---
    slab = jnp.zeros((F2, SLAB_W), jnp.float32)
    slab = slab.at[:, 0:KL * CHANS].set(w1f)
    slab = slab.at[:, 128:256].set(jnp.broadcast_to(bias1[:, None], (F1D, 128)))
    slab = slab.at[:, 256:256 + F1D].set(wps3)
    slab = slab.at[:, 384:384 + B * T1].set(
        jnp.broadcast_to(b3[:, None], (F2, B * T1)))
    slab = slab.at[:, 512:512 + F1D * B * T1].set(dmask)
    return slab, gall, rsum, p8


def _prepare_xim(x):
    """Host-side block1 im2col: rows (k*CHANS + c), lanes (b*SAMPLES + t)."""
    xpad = jnp.pad(x[:, 0], ((0, 0), (0, 0), (PAD_L, PAD_R)))        # (B, CHANS, 79)
    taps = jnp.stack([xpad[:, :, k:k + SAMPLES] for k in range(KL)], axis=0)
    return taps.transpose(0, 2, 1, 3).reshape(KL * CHANS, B * SAMPLES)  # (64, 128)


# ------------------------------- wrapper -------------------------------------
def eegnet_feature_pallas(x, params):
    """x: (B, 1, Chans, Samples) float32 (NCHW, like PyTorch). Returns (B, F2*T2)."""
    slab, gall, rsum, p8 = _prepare_constants(params)
    xim = _prepare_xim(x)

    out = pl.pallas_call(
        eegnet_kernel,
        out_shape=jax.ShapeDtypeStruct((F2, B * T2), jnp.float32),
    )(xim, slab, gall, rsum, p8)

    # out[f2, b*T2 + j] -> (B, F2*T2), f2-major (matches torch .reshape(B, -1))
    return out.reshape(F2, B, T2).transpose(1, 0, 2).reshape(B, F2 * T2)


# --------------------------- pure-JAX reference ------------------------------
def _elu_ref(x):
    return jnp.where(x > 0, x, jnp.exp(x) - 1.0)


def eegnet_feature_reference(x, params):
    (w1, s1, b1, wdw_full, s2, b2, wdw2, wpw, s3, b3) = params
    dn = ('NCHW', 'OIHW', 'NCHW')
    hp = lax.Precision.HIGHEST

    y = jnp.pad(x, ((0, 0), (0, 0), (0, 0), (PAD_L, PAD_R)))
    y = lax.conv_general_dilated(y, w1.reshape(F1, 1, 1, KL), (1, 1), 'VALID',
                                 dimension_numbers=dn, precision=hp)
    y = y * s1.reshape(1, F1, 1, 1) + b1.reshape(1, F1, 1, 1)
    y = lax.conv_general_dilated(y, wdw_full.reshape(F1D, 1, CHANS, 1), (1, 1),
                                 'VALID', dimension_numbers=dn,
                                 feature_group_count=F1, precision=hp)
    y = y * s2.reshape(1, F1D, 1, 1) + b2.reshape(1, F1D, 1, 1)
    y = _elu_ref(y)
    y = y.reshape(B, F1D, 1, T1, 4).mean(-1)

    y = jnp.pad(y, ((0, 0), (0, 0), (0, 0), (P2L, P2R)))
    y = lax.conv_general_dilated(y, wdw2.reshape(F1D, 1, 1, KL2), (1, 1), 'VALID',
                                 dimension_numbers=dn, feature_group_count=F1D,
                                 precision=hp)
    y = lax.conv_general_dilated(y, wpw.reshape(F2, F1D, 1, 1), (1, 1), 'VALID',
                                 dimension_numbers=dn, precision=hp)
    y = y * s3.reshape(1, F2, 1, 1) + b3.reshape(1, F2, 1, 1)
    y = _elu_ref(y)
    y = y.reshape(B, F2, 1, T2, 8).mean(-1)
    return y.reshape(B, -1)


# ----------------------------- parameter init --------------------------------
def make_params(key):
    ks = jax.random.split(key, 8)

    w1 = jax.random.normal(ks[0], (F1, KL), jnp.float32) * 0.3
    wdw_full = jax.random.normal(ks[1], (F1D, CHANS), jnp.float32) * 0.3
    wdw2 = jax.random.normal(ks[2], (F1D, KL2), jnp.float32) * 0.3
    wpw = jax.random.normal(ks[3], (F2, F1D), jnp.float32) * 0.3

    def bn(k, c):
        k1, k2, k3, k4 = jax.random.split(k, 4)
        gamma = jax.random.uniform(k1, (c,), jnp.float32, 0.5, 1.5)
        beta = jax.random.normal(k2, (c,), jnp.float32) * 0.1
        mean = jax.random.normal(k3, (c,), jnp.float32) * 0.1
        var = jax.random.uniform(k4, (c,), jnp.float32, 0.5, 1.5)
        scale = gamma / jnp.sqrt(var + 1e-5)
        bias = beta - mean * scale
        return scale, bias

    s1, b1 = bn(ks[4], F1)
    s2, b2 = bn(ks[5], F1D)
    s3, b3 = bn(ks[6], F2)
    return (w1, s1, b1, wdw_full, s2, b2, wdw2, wpw, s3, b3)


# ---------------------------------- main --------------------------------------
if __name__ == "__main__":
    key = jax.random.PRNGKey(0)
    k_param, k_x = jax.random.split(key)

    params = make_params(k_param)
    x = jax.random.normal(k_x, (B, 1, CHANS, SAMPLES), jnp.float32)

    out = jax.block_until_ready(jax.jit(eegnet_feature_pallas)(x, params))
    ref = jax.block_until_ready(eegnet_feature_reference(x, params))

    assert out.shape == (B, F2 * T2), out.shape
    # kernel matmuls run at default MXU precision (bf16 passes); reference is
    # computed at Precision.HIGHEST -> allow bf16-level tolerance.
    np.testing.assert_allclose(np.asarray(out), np.asarray(ref),
                               rtol=2e-2, atol=2e-2)
    print("KERNEL_OK")
</pallas_src>

<mosaic_0001>
module attributes {stable_mosaic.version = 11 : i64} {
  func.func @eegnet_kernel(%arg0: memref<64x128xf32, #tpu.memory_space<vmem>>, %arg1: memref<8x768xf32, #tpu.memory_space<vmem>>, %arg2: memref<128x256xf32, #tpu.memory_space<vmem>>, %arg3: memref<256x32xf32, #tpu.memory_space<vmem>>, %arg4: memref<32x4xf32, #tpu.memory_space<vmem>>, %arg5: memref<8x4xf32, #tpu.memory_space<vmem>>) attributes {dimension_semantics = [], scalar_prefetch = 0 : i64, scratch_operands = 0 : i64, tpu.core_type = #tpu.core_type<tc>} {
    %c0 = arith.constant 0 : index
    %c0_0 = arith.constant 0 : index
    %0 = vector.load %arg1[%c0, %c0_0] : memref<8x768xf32, #tpu.memory_space<vmem>>, vector<8x64xf32>
    %c0_1 = arith.constant 0 : index
    %c128 = arith.constant 128 : index
    %1 = vector.load %arg1[%c0_1, %c128] : memref<8x768xf32, #tpu.memory_space<vmem>>, vector<8x128xf32>
    %c0_2 = arith.constant 0 : index
    %c256 = arith.constant 256 : index
    %2 = vector.load %arg1[%c0_2, %c256] : memref<8x768xf32, #tpu.memory_space<vmem>>, vector<8x8xf32>
    %c0_3 = arith.constant 0 : index
    %c384 = arith.constant 384 : index
    %3 = vector.load %arg1[%c0_3, %c384] : memref<8x768xf32, #tpu.memory_space<vmem>>, vector<8x32xf32>
    %c0_4 = arith.constant 0 : index
    %c512 = arith.constant 512 : index
    %4 = vector.load %arg1[%c0_4, %c512] : memref<8x768xf32, #tpu.memory_space<vmem>>, vector<8x256xf32>
    %c0_5 = arith.constant 0 : index
    %c0_6 = arith.constant 0 : index
    %5 = vector.load %arg0[%c0_5, %c0_6] : memref<64x128xf32, #tpu.memory_space<vmem>>, vector<64x128xf32>
    %cst = arith.constant dense<0.000000e+00> : vector<8x128xf32>
    %6 = tpu.matmul %0, %5, %cst {dimension_numbers = #tpu.dot_dimension_numbers<[1], [0], [0], [1], [0, 0, 1, 1], [], []>} : vector<8x64xf32>, vector<64x128xf32>, vector<8x128xf32> -> vector<8x128xf32>
    %7 = arith.addf %6, %1 : vector<8x128xf32>
    %cst_7 = arith.constant 0.000000e+00 : f32
    %8 = vector.broadcast %cst_7 : f32 to vector<8x128xf32>
    %9 = arith.cmpf ogt, %7, %8 : vector<8x128xf32>
    %cst_8 = arith.constant 0.000000e+00 : f32
    %10 = vector.broadcast %cst_8 : f32 to vector<8x128xf32>
    %11 = arith.minimumf %7, %10 : vector<8x128xf32>
    %12 = math.exp %11 : vector<8x128xf32>
    %cst_9 = arith.constant 1.000000e+00 : f32
    %13 = vector.broadcast %cst_9 : f32 to vector<8x128xf32>
    %14 = arith.subf %12, %13 : vector<8x128xf32>
    %15 = arith.select %9, %7, %14 : vector<8x128xi1>, vector<8x128xf32>
    %c0_10 = arith.constant 0 : index
    %c0_11 = arith.constant 0 : index
    %16 = vector.load %arg2[%c0_10, %c0_11] : memref<128x256xf32, #tpu.memory_space<vmem>>, vector<128x256xf32>
    %cst_12 = arith.constant dense<0.000000e+00> : vector<8x256xf32>
    %17 = tpu.matmul %15, %16, %cst_12 {dimension_numbers = #tpu.dot_dimension_numbers<[1], [0], [0], [1], [0, 0, 1, 1], [], []>} : vector<8x128xf32>, vector<128x256xf32>, vector<8x256xf32> -> vector<8x256xf32>
    %18 = arith.mulf %17, %4 : vector<8x256xf32>
    %c0_13 = arith.constant 0 : index
    %c0_14 = arith.constant 0 : index
    %19 = vector.load %arg3[%c0_13, %c0_14] : memref<256x32xf32, #tpu.memory_space<vmem>>, vector<256x32xf32>
    %cst_15 = arith.constant dense<0.000000e+00> : vector<8x32xf32>
    %20 = tpu.matmul %18, %19, %cst_15 {dimension_numbers = #tpu.dot_dimension_numbers<[1], [0], [0], [1], [0, 0, 1, 1], [], []>} : vector<8x256xf32>, vector<256x32xf32>, vector<8x32xf32> -> vector<8x32xf32>
    %cst_16 = arith.constant dense<0.000000e+00> : vector<8x32xf32>
    %21 = tpu.matmul %2, %20, %cst_16 {dimension_numbers = #tpu.dot_dimension_numbers<[1], [0], [0], [1], [0, 0, 1, 1], [], []>} : vector<8x8xf32>, vector<8x32xf32>, vector<8x32xf32> -> vector<8x32xf32>
    %22 = arith.addf %21, %3 : vector<8x32xf32>
    %cst_17 = arith.constant 0.000000e+00 : f32
    %23 = vector.broadcast %cst_17 : f32 to vector<8x32xf32>
    %24 = arith.cmpf ogt, %22, %23 : vector<8x32xf32>
    %cst_18 = arith.constant 0.000000e+00 : f32
    %25 = vector.broadcast %cst_18 : f32 to vector<8x32xf32>
    %26 = arith.minimumf %22, %25 : vector<8x32xf32>
    %27 = math.exp %26 : vector<8x32xf32>
    %cst_19 = arith.constant 1.000000e+00 : f32
    %28 = vector.broadcast %cst_19 : f32 to vector<8x32xf32>
    %29 = arith.subf %27, %28 : vector<8x32xf32>
    %30 = arith.select %24, %22, %29 : vector<8x32xi1>, vector<8x32xf32>
    %c0_20 = arith.constant 0 : index
    %c0_21 = arith.constant 0 : index
    %31 = vector.load %arg4[%c0_20, %c0_21] : memref<32x4xf32, #tpu.memory_space<vmem>>, vector<32x4xf32>
    %cst_22 = arith.constant dense<0.000000e+00> : vector<8x4xf32>
    %32 = tpu.matmul %30, %31, %cst_22 {dimension_numbers = #tpu.dot_dimension_numbers<[1], [0], [0], [1], [0, 0, 1, 1], [], []>} : vector<8x32xf32>, vector<32x4xf32>, vector<8x4xf32> -> vector<8x4xf32>
    %c0_23 = arith.constant 0 : index
    %c0_24 = arith.constant 0 : index
    %33 = vector.load %arg5[%c0_23, %c0_24] : memref<8x4xf32, #tpu.memory_space<vmem>>, vector<8x4xf32>
    tpu.vector_store %arg5[%c0_23, %c0_24], %32 {strides = array<i32>} : memref<8x4xf32, #tpu.memory_space<vmem>>, vector<8x4xf32>,
    return
  }
}

</mosaic_0001>

<bundles_post_ra>
// kernel: eegnet_feature_pallas.1
= control target key start
LH: loop header
LB: loop body
LE: loop exit
PB: predicated region body
PF: predicated region fallthrough
CT: control target
= control target key end

     0   :  { %v582_v0 = vmov 0.0   ;;  %vm583_vm0 = vmmov 0   ;;  %vm34_vm1 = vcmask 523264   ;;  %vm321_vm3 = vcmask 64512   ;;  %s883_s0 = inlined_call_operand.vmem [shape: f32[64,128], index: 0, kind: input, shape index: {}]   ;;  %s884_s2 = inlined_call_operand.vmem [shape: f32[128,256], index: 2, kind: input, shape index: {}]   ;;  %s885_s1 = inlined_call_operand.vmem [shape: f32[8,768], index: 1, kind: input, shape index: {}]   ;;  %s886_s3 = inlined_call_operand.vmem [shape: f32[256,32], index: 3, kind: input, shape index: {}]   ;;  %s887_s4 = inlined_call_operand.vmem [shape: f32[32,4], index: 4, kind: input, shape index: {}]   ;;  %s888_s5 = inlined_call_operand.vmem [shape: f32[8,4], index: 5, kind: output, shape index: {}]  }
   0x1   :  { %541 = vmatprep.subr.mxu0 %v582_v0  ;;  %v33_v1 = vld [vmem:[%s883_s0 + $0x38] sm:$0xff]  ;;  %v32_v2 = vld [vmem:[%s883_s0 + $0x30] sm:$0xff]  ;;  %557 = vmatprep.mubr.msk.f32.mxu0 %vm583_vm0, %v582_v0  ;;  %v31_v3 = vld [vmem:[%s883_s0 + $0x28] sm:$0xff]  ;;  %vm405_vm4 = vcmask 261120   ;;  %vm479_vm6 = vcmask 31744  }
   0x2   :  { %542 = vmatpush3.msra.mxu0 %v33_v1  ;;  %210 = vmatprep.mubr.f32.mxu1 %v582_v0  ;;  %v145_v4 = vld [vmem:[%s884_s2 + $0xf8] sm:$0xff]  ;;  %v144_v5 = vld [vmem:[%s884_s2 + $0xf0] sm:$0xff]  ;;  %v143_v6 = vld [vmem:[%s884_s2 + $0xe8] sm:$0xff] }
   0x3   :  { %543 = vmatprep.subr.mxu0 %v582_v0  ;;  %v30_v7 = vld [vmem:[%s883_s0 + $0x20] sm:$0xff]  ;;  %146 = vmatprep.subr.mxu1 %v145_v4  ;;  %v141_v9 = vld [vmem:[%s884_s2 + $0xd8] sm:$0xff]  ;;  %v140_v11 = vld [vmem:[%s884_s2 + $0xd0] sm:$0xff] }
   0x4   :  { %544 = vmatpush3.msra.mxu0 %v32_v2  ;;  %v142_v8 = vld [vmem:[%s884_s2 + $0xe0] sm:$0xff]  ;;  %147 = vmatpush1.msra.mxu1 %v144_v5  ;;  %v29_v10 = vld [vmem:[%s883_s0 + $0x18] sm:$0xff]  ;;  %v139_v12 = vld [vmem:[%s884_s2 + $0xc8] sm:$0xff] }
   0x5   :  { %545 = vmatprep.subr.mxu0 %v582_v0  ;;  %148 = vmatprep.subr.mxu1 %v143_v6  ;;  %v28_v13 = vld [vmem:[%s883_s0 + $0x10] sm:$0xff]  ;;  %v138_v14 = vld [vmem:[%s884_s2 + $0xc0] sm:$0xff]  ;;  %v27_v15 = vld [vmem:[%s883_s0 + $0x8] sm:$0xff] }
   0x6   :  { %546 = vmatpush3.msra.mxu0 %v31_v3  ;;  %149 = vmatpush1.msra.mxu1 %v142_v8  ;;  %v26_v16 = vld [vmem:[%s883_s0] sm:$0xff]  ;;  %v137_v18 = vld [vmem:[%s884_s2 + $0xb8] sm:$0xff]  ;;  %v136_v19 = vld [vmem:[%s884_s2 + $0xb0] sm:$0xff] }
   0x7   :  { %547 = vmatprep.subr.mxu0 %v582_v0  ;;  %150 = vmatprep.subr.mxu1 %v141_v9  ;;  %v20_v17 = vld [vmem:[%s885_s1] sm:$0xff]  ;;  %v135_v20 = vld [vmem:[%s884_s2 + $0xa8] sm:$0xff]  ;;  %v133_v22 = vld [vmem:[%s884_s2 + $0x98] sm:$0xff] }
   0x8   :  { %548 = vmatpush3.msra.mxu0 %v30_v7  ;;  %151 = vmatpush1.msra.mxu1 %v140_v11  ;;  %v134_v21 = vld [vmem:[%s884_s2 + $0xa0] sm:$0xff]  ;;  %v132_v23 = vld [vmem:[%s884_s2 + $0x90] sm:$0xff]  ;;  %v131_v24 = vld [vmem:[%s884_s2 + $0x88] sm:$0xff] }
   0x9   :  { %549 = vmatprep.subr.mxu0 %v582_v0  ;;  %152 = vmatprep.subr.mxu1 %v139_v12  ;;  %v130_v25 = vld [vmem:[%s884_s2 + $0x80] sm:$0xff]  ;;  %v129_v26 = vld [vmem:[%s884_s2 + $0x78] sm:$0xff]  ;;  %v128_v27 = vld [vmem:[%s884_s2 + $0x70] sm:$0xff] }
   0xa   :  { %550 = vmatpush3.msra.mxu0 %v29_v10  ;;  %153 = vmatpush1.msra.mxu1 %v138_v14  ;;  %v127_v28 = vld [vmem:[%s884_s2 + $0x68] sm:$0xff]  ;;  %v126_v29 = vld [vmem:[%s884_s2 + $0x60] sm:$0xff]  ;;  %v125_v30 = vld [vmem:[%s884_s2 + $0x58] sm:$0xff] }
   0xb   :  { %551 = vmatprep.subr.mxu0 %v582_v0  ;;  %154 = vmatprep.subr.mxu1 %v137_v18  ;;  %v124_v31 = vld [vmem:[%s884_s2 + $0x50] sm:$0xff]  ;;  %v123_v32 = vld [vmem:[%s884_s2 + $0x48] sm:$0xff]  ;;  %v122_v33 = vld [vmem:[%s884_s2 + $0x40] sm:$0xff] }
   0xc   :  { %552 = vmatpush3.msra.mxu0 %v28_v13  ;;  %155 = vmatpush1.msra.mxu1 %v136_v19  ;;  %v121_v34 = vld [vmem:[%s884_s2 + $0x38] sm:$0xff]  ;;  %v120_v35 = vld [vmem:[%s884_s2 + $0x30] sm:$0xff]  ;;  %v119_v36 = vld [vmem:[%s884_s2 + $0x28] sm:$0xff] }
   0xd   :  { %553 = vmatprep.subr.mxu0 %v582_v0  ;;  %156 = vmatprep.subr.mxu1 %v135_v20  ;;  %v118_v37 = vld [vmem:[%s884_s2 + $0x20] sm:$0xff]  ;;  %v117_v38 = vld [vmem:[%s884_s2 + $0x18] sm:$0xff]  ;;  %v116_v39 = vld [vmem:[%s884_s2 + $0x10] sm:$0xff] }
   0xe   :  { %554 = vmatpush3.msra.mxu0 %v27_v15  ;;  %157 = vmatpush1.msra.mxu1 %v134_v21  ;;  %v115_v40 = vld [vmem:[%s884_s2 + $0x8] sm:$0xff]  ;;  %v114_v41 = vld [vmem:[%s884_s2] sm:$0xff]  ;;  %v250_v42 = vld [vmem:[%s886_s3 + $0xf8] sm:$0xff] }
   0xf   :  { %555 = vmatprep.subr.mxu0 %v582_v0  ;;  %158 = vmatprep.subr.mxu1 %v133_v22  ;;  %v234_v43 = vld [vmem:[%s886_s3 + $0x78] sm:$0xff]  ;;  %v249_v44 = vld [vmem:[%s886_s3 + $0xf0] sm:$0xff]  ;;  %v248_v46 = vld [vmem:[%s886_s3 + $0xe8] sm:$0xff] }
  0x10   :  { %556 = vmatpush3.msra.mxu0 %v26_v16  ;;  %159 = vmatpush1.msra.mxu1 %v132_v23  ;;  %v233_v45 = vld [vmem:[%s886_s3 + $0x70] sm:$0xff]  ;;  %v232_v47 = vld [vmem:[%s886_s3 + $0x68] sm:$0xff]  ;;  %v247_v48 = vld [vmem:[%s886_s3 + $0xe0] sm:$0xff] }
  0x11   :  { %558 = vmatmul.mubr.msk.f32.vlgmr.msra.gmra.mxu0 %vm34_vm1, %v20_v17  ;;  %160 = vmatprep.subr.mxu1 %v131_v24  ;;  %v231_v49 = vld [vmem:[%s886_s3 + $0x60] sm:$0xff]  ;;  %v246_v50 = vld [vmem:[%s886_s3 + $0xd8] sm:$0xff]  ;;  %v245_v52 = vld [vmem:[%s886_s3 + $0xd0] sm:$0xff] }
  0x12   :  { %161 = vmatpush1.msra.mxu1 %v130_v25  ;;  %499 = vmatprep.subr.mxu0 %v250_v42  ;;  %v230_v51 = vld [vmem:[%s886_s3 + $0x58] sm:$0xff]  ;;  %v229_v53 = vld [vmem:[%s886_s3 + $0x50] sm:$0xff]  ;;  %v244_v54 = vld [vmem:[%s886_s3 + $0xc8] sm:$0xff] }
  0x13   :  { %162 = vmatprep.subr.mxu1 %v129_v26  ;;  %500 = vmatpush3.msra.mxu0 %v234_v43  ;;  %v228_v55 = vld [vmem:[%s886_s3 + $0x48] sm:$0xff]  ;;  %v243_v56 = vld [vmem:[%s886_s3 + $0xc0] sm:$0xff]  ;;  %v242_v58 = vld [vmem:[%s886_s3 + $0xb8] sm:$0xff] }
  0x14   :  { %163 = vmatpush1.msra.mxu1 %v128_v27  ;;  %501 = vmatprep.subr.mxu0 %v249_v44  ;;  %v227_v57 = vld [vmem:[%s886_s3 + $0x40] sm:$0xff]  ;;  %v226_v59 = vld [vmem:[%s886_s3 + $0x38] sm:$0xff]  ;;  %v241_v60 = vld [vmem:[%s886_s3 + $0xb0] sm:$0xff] }
  0x15   :  { %164 = vmatprep.subr.mxu1 %v127_v28  ;;  %502 = vmatpush3.msra.mxu0 %v233_v45  ;;  %v225_v61 = vld [vmem:[%s886_s3 + $0x30] sm:$0xff]  ;;  %v240_v62 = vld [vmem:[%s886_s3 + $0xa8] sm:$0xff]  ;;  %v239_v1 = vld [vmem:[%s886_s3 + $0xa0] sm:$0xff] }
  0x16   :  { %165 = vmatpush1.msra.mxu1 %v126_v29  ;;  %503 = vmatprep.subr.mxu0 %v248_v46  ;;  %v224_v63 = vld [vmem:[%s886_s3 + $0x28] sm:$0xff]  ;;  %v223_v2 = vld [vmem:[%s886_s3 + $0x20] sm:$0xff]  ;;  %v238_v3 = vld [vmem:[%s886_s3 + $0x98] sm:$0xff] }
  0x17   :  { %166 = vmatprep.subr.mxu1 %v125_v30  ;;  %504 = vmatpush3.msra.mxu0 %v232_v47  ;;  %v222_v4 = vld [vmem:[%s886_s3 + $0x18] sm:$0xff]  ;;  %v21_v5 = vld [vmem:[%s885_s1 + $0x8] sm:$0xff]  ;;  %v237_v14 = vld [vmem:[%s886_s3 + $0x90] sm:$0xff] }
  0x18   :  { %167 = vmatpush1.msra.mxu1 %v124_v31  ;;  %505 = vmatprep.subr.mxu0 %v247_v48  ;;  %v221_v15 = vld [vmem:[%s886_s3 + $0x10] sm:$0xff]  ;;  %v236_v16 = vld [vmem:[%s886_s3 + $0x88] sm:$0xff]  ;;  %v235_v18 = vld [vmem:[%s886_s3 + $0x80] sm:$0xff] }
  0x19   :  { %168 = vmatprep.subr.mxu1 %v123_v32  ;;  %506 = vmatpush3.msra.mxu0 %v231_v49  ;;  %v220_v17 = vld [vmem:[%s886_s3 + $0x8] sm:$0xff]  ;;  %v219_v19 = vld [vmem:[%s886_s3] sm:$0xff]  ;;  %v22_v29 = vld [vmem:[%s885_s1 + $0x10] sm:$0xff] }
  0x1a   :  { %169 = vmatpush1.msra.mxu1 %v122_v33  ;;  %507 = vmatprep.subr.mxu0 %v246_v50  ;;  %v25_v21 = vld [vmem:[%s885_s1 + $0x28] sm:$0xff]  ;;  %v24_v22 = vld [vmem:[%s885_s1 + $0x20] sm:$0xff]  ;;  %v404_v30 = vld [vmem:[%s887_s4 + $0x18] sm:$0xff] }
  0x1b   :  { %170 = vmatprep.subr.mxu1 %v121_v34  ;;  %508 = vmatpush3.msra.mxu0 %v230_v51  ;;  %v403_v31 = vld [vmem:[%s887_s4 + $0x10] sm:$0xff]  ;;  %v402_v32 = vld [vmem:[%s887_s4 + $0x8] sm:$0xff]  ;;  %v401_v33 = vld [vmem:[%s887_s4] sm:$0xff] }
  0x1c   :  { %171 = vmatpush1.msra.mxu1 %v120_v35  ;;  %509 = vmatprep.subr.mxu0 %v245_v52  ;;  %v23_v34 = vld [vmem:[%s885_s1 + $0x18] sm:$0xff] }
  0x1d   :  { %172 = vmatprep.subr.mxu1 %v119_v36  ;;  %510 = vmatpush3.msra.mxu0 %v229_v53 }
  0x1e   :  { %173 = vmatpush1.msra.mxu1 %v118_v37  ;;  %511 = vmatprep.subr.mxu0 %v244_v54 }
  0x1f   :  { %174 = vmatprep.subr.mxu1 %v117_v38  ;;  %512 = vmatpush3.msra.mxu0 %v228_v55 }
  0x20   :  { %175 = vmatpush1.msra.mxu1 %v116_v39  ;;  %513 = vmatprep.subr.mxu0 %v243_v56 }
  0x21   :  { %176 = vmatprep.subr.mxu1 %v115_v40  ;;  %514 = vmatpush3.msra.mxu0 %v227_v57 }
  0x22   :  { %177 = vmatpush1.msra.mxu1 %v114_v41  ;;  %515 = vmatprep.subr.mxu0 %v242_v58 }
  0x23   :  { %560 = vmatprep.subr.mxu1 %v582_v0  ;;  %516 = vmatpush3.msra.mxu0 %v226_v59 }
  0x24   :  { %517 = vmatprep.subr.mxu0 %v241_v60 }
  0x25   :  { %518 = vmatpush3.msra.mxu0 %v225_v61 }
  0x26   :  { %519 = vmatprep.subr.mxu0 %v240_v62 }
  0x27   :  { %520 = vmatpush3.msra.mxu0 %v224_v63 }
  0x28   :  { %521 = vmatprep.subr.mxu0 %v239_v1 }
  0x29   :  { %522 = vmatpush3.msra.mxu0 %v223_v2 }
  0x2a   :  { %523 = vmatprep.subr.mxu0 %v238_v3 }
  0x2b   :  { %524 = vmatpush3.msra.mxu0 %v222_v4 }
  0x2c   :  { %525 = vmatprep.subr.mxu0 %v237_v14 }
  0x2d   :  { %526 = vmatpush3.msra.mxu0 %v221_v15 }
  0x2e   :  { %527 = vmatprep.subr.mxu0 %v236_v16 }
  0x2f   :  { %528 = vmatpush3.msra.mxu0 %v220_v17 }
  0x30   :  { %529 = vmatprep.subr.mxu0 %v235_v18 }
  0x31   :  { %530 = vmatpush3.msra.mxu0 %v219_v19 }
  0xd1   :  { %v104_v6 = vpop.f32.mrf.mxu0 }
  0xd2   :  { %v105_v7 = vadd.f32 %v104_v6, %v21_v5 }
  0xd3   :  { %v559_v8 = vpop.f32.mrf.mxu0 }
  0xd4   :  { %v109_v9 = vmin.f32 %v105_v7, 0.0  ;;  %vm108_vm2 = vcmp.gt.f32.partialorder %v105_v7, 0.0 }
  0xd6   :  { %v110_v10 = vmul.f32 1.442695, %v109_v9 }
  0xd8   :  { %578 = vpow2.f32 %v110_v10 }
  0xe5   :  { %v579_v11 = vpop.eup %578 }
  0xe6   :  { %v486_v12 = vadd.f32 -1.0, %v579_v11 }
  0xe8   :  { %v113_v13 = vsel %vm108_vm2, %v105_v7, %v486_v12 }
  0xe9   :  { %211 = vmatmul.mubr.f32.vlgmr.msra.gmra.mxu1 %v113_v13 }
  0xea   :  { %562 = vmatprep.mubr.msk.f32.mxu1 %vm583_vm0, %v582_v0 }
 0x1a9   :  { %v212_v20 = vpop.f32.mrf.mxu1 }
 0x1aa   :  { %v217_v25 = vmul.f32 %v212_v20, %v24_v22 }
 0x1ab   :  { %v214_v23 = vpop.f32.mrf.mxu1 }
 0x1ac   :  { %v218_v24 = vmul.f32 %v214_v23, %v25_v21 }
 0x1ae   :  { %315 = vmatprep.mubr.f32.mxu0 %v218_v24 }
 0x1af   :  { %316 = vmatmul.mubr.f32.vlgmr.msra.gmra.mxu0 %v217_v25 }
 0x26f   :  { %v531_v26 = vpop.f32.mrf.mxu0 }
 0x271   :  { %v532_v27 = vpop.f32.mrf.mxu0 }
 0x272   :  { %v533_v28 = vadd.f32 %v532_v27, %v531_v26 }
 0x274   :  { %561 = vmatpush3.msra.mxu1 %v533_v28 }
 0x275   :  { %563 = vmatmul.mubr.msk.f32.vlgmr.msra.gmra.mxu1 %vm321_vm3, %v22_v29  ;;  %565 = vmatprep.subr.mxu1 %v582_v0 }
 0x276   :  { %573 = vmatprep.mubr.msk.f32.mxu1 %vm583_vm0, %v582_v0  ;;  %566 = vmatpush3.msra.mxu1 %v404_v30 }
 0x277   :  { %567 = vmatprep.subr.mxu1 %v582_v0 }
 0x278   :  { %568 = vmatpush3.msra.mxu1 %v403_v31 }
 0x279   :  { %569 = vmatprep.subr.mxu1 %v582_v0 }
 0x27a   :  { %570 = vmatpush3.msra.mxu1 %v402_v32 }
 0x27b   :  { %571 = vmatprep.subr.mxu1 %v582_v0 }
 0x27c   :  { %572 = vmatpush3.msra.mxu1 %v401_v33 }
 0x335   :  { %v391_v35 = vpop.f32.mrf.mxu1 }
 0x336   :  { %v392_v36 = vadd.f32 %v391_v35, %v23_v34 }
 0x337   :  { %v564_v37 = vpop.f32.mrf.mxu1 }
 0x338   :  { %v396_v38 = vmin.f32 %v392_v36, 0.0  ;;  %vm395_vm5 = vcmp.gt.f32.partialorder %v392_v36, 0.0 }
 0x33a   :  { %v397_v39 = vmul.f32 1.442695, %v396_v38 }
 0x33c   :  { %580 = vpow2.f32 %v397_v39 }
 0x349   :  { %v581_v40 = vpop.eup %580 }
 0x34a   :  { %v488_v41 = vadd.f32 -1.0, %v581_v40 }
 0x34c   :  { %v400_v0 = vsel %vm395_vm5, %v392_v36, %v488_v41 }
 0x34d   :  { %574 = vmatmul.mubr.msk.f32.vlgmr.msra.gmra.mxu1 %vm405_vm4, %v400_v0 }
 0x40d   :  { %v475_v42 = vpop.f32.mrf.mxu1 }
 0x40e   :  { %480 = vst.msk [vmem:[%s888_s5] sm:$0xff] %vm479_vm6, %v475_v42 }
 0x40f   :  { %v575_v43 = vpop.f32.mrf.mxu1 }

</bundles_post_ra>
